<compile_context>
chip_gen: v5e
topology: v5e:2x2
jax: 0.10.0
libtpu: 0.0.40
codegen_flags: <defaults>
</compile_context>

<pallas_src>
import functools

import jax
import jax.numpy as jnp
from jax.experimental import pallas as pl
from jax.experimental.pallas import tpu as pltpu


# -----------------------------------------------------------------------------
# Kernel
# -----------------------------------------------------------------------------
def _single_step_gru_kernel(x_ref, h_ref, w_ref, v_ref, y_ref, h_out_ref, *, F, H):
    """x_ref: (B,F)   h_ref: (2,B,H)
       w_ref: (F+3H, 4H)  = [Wx0 ; Wh0 ; Wx1 ; Wh1], each with gate columns [r|z|in|hn]
       v_ref: (4, 4H)     = [b0 ; b1 ; w_lin(+zeros) ; b_lin(broadcast)]"""
    x = x_ref[...]                     # (B, F)   (BN already folded into Wx0 / b0)
    h0 = h_ref[0]                      # (B, H)
    h1 = h_ref[1]                      # (B, H)

    def mm(a, b):
        return jnp.dot(a, b, preferred_element_type=jnp.float32)

    # static, sublane-aligned weight-slab slices (F, H multiples of 8)
    wx0 = w_ref[0:F, :]                # (F, 4H)
    wh0 = w_ref[F:F + H, :]            # (H, 4H)
    wx1 = w_ref[F + H:F + 2 * H, :]    # (H, 4H)
    wh1 = w_ref[F + 2 * H:F + 3 * H, :]

    b0 = v_ref[0:1, :]                 # (1, 4H)
    b1 = v_ref[1:2, :]                 # (1, 4H)
    w_lin = v_ref[2:3, 0:H]            # (1, H)   offset-0 lane slice
    b_lin = v_ref[3:4, 0:1]            # (1, 1)   offset-0 lane slice

    def gru_update(g, h_prev):         # g: (B, 4H) = [r | z | in | hn]
        r = jax.nn.sigmoid(g[:, 0:H])
        z = jax.nn.sigmoid(g[:, H:2 * H])
        n = jnp.tanh(g[:, 2 * H:3 * H] + r * g[:, 3 * H:4 * H])
        return (1.0 - z) * n + z * h_prev

    # ---- GRU layer 0 (PyTorch gate order r, z, n; BN folded into x side) ----
    g0 = mm(x, wx0) + mm(h0, wh0) + b0          # (B, 4H) single lane-dense gate slab
    h0n = gru_update(g0, h0)

    # ---- GRU layer 1 ----
    g1 = mm(h0n, wx1) + mm(h1, wh1) + b1
    h1n = gru_update(g1, h1)

    # ---- Linear(H -> 1) ----
    y_ref[...] = jnp.sum(h1n * w_lin, axis=1, keepdims=True) + b_lin   # (B, 1)
    h_out_ref[0] = h0n
    h_out_ref[1] = h1n


# -----------------------------------------------------------------------------
# One-time parameter packing (BN folded, weights pre-transposed, gates packed
# side-by-side into 4H lane-dense blocks, zero blocks for the in/hn structure)
# -----------------------------------------------------------------------------
def prepare_params(params, eps=1e-5):
    F = params["bn_gamma"].shape[0]
    H = params["w_hh_l0"].shape[1]
    assert F % 8 == 0 and H % 8 == 0, "feature_dim and hidden_size must be multiples of 8"

    # eval-mode BN: xn = a*x + c
    a = params["bn_gamma"] / jnp.sqrt(params["bn_var"] + eps)           # (F,)
    c = params["bn_beta"] - params["bn_mean"] * a                       # (F,)

    wi0 = params["w_ih_l0"].T                                           # (F, 3H)
    wh0 = params["w_hh_l0"].T                                           # (H, 3H)
    wi1 = params["w_ih_l1"].T                                           # (H, 3H)
    wh1 = params["w_hh_l1"].T                                           # (H, 3H)

    def g(w_t, k):                                                      # gate-k column block
        return w_t[:, k * H:(k + 1) * H]

    def gb(b, k):
        return b[k * H:(k + 1) * H]

    zF = jnp.zeros((F, H), jnp.float32)
    zH = jnp.zeros((H, H), jnp.float32)

    # x-side layer 0, BN row-scale folded in, gate columns [r | z | in | 0]
    wx0 = jnp.concatenate([g(wi0, 0), g(wi0, 1), g(wi0, 2), zF], axis=1) * a[:, None]
    # h-side layer 0, gate columns [r | z | 0 | hn]
    wh0_s = jnp.concatenate([g(wh0, 0), g(wh0, 1), zH, g(wh0, 2)], axis=1)
    # layer 1
    wx1_s = jnp.concatenate([g(wi1, 0), g(wi1, 1), g(wi1, 2), zH], axis=1)
    wh1_s = jnp.concatenate([g(wh1, 0), g(wh1, 1), zH, g(wh1, 2)], axis=1)

    w_slab = jnp.concatenate([wx0, wh0_s, wx1_s, wh1_s], axis=0).astype(jnp.float32)  # (F+3H, 4H)

    bi0, bh0 = params["b_ih_l0"], params["b_hh_l0"]
    bi1, bh1 = params["b_ih_l1"], params["b_hh_l1"]

    # layer-0 bias with BN shift folded in:  c @ Wx_gate
    b0 = jnp.concatenate([
        gb(bi0, 0) + gb(bh0, 0) + c @ g(wi0, 0),
        gb(bi0, 1) + gb(bh0, 1) + c @ g(wi0, 1),
        gb(bi0, 2) + c @ g(wi0, 2),
        gb(bh0, 2),
    ])                                                                  # (4H,)
    b1 = jnp.concatenate([
        gb(bi1, 0) + gb(bh1, 0),
        gb(bi1, 1) + gb(bh1, 1),
        gb(bi1, 2),
        gb(bh1, 2),
    ])                                                                  # (4H,)
    lin_row = jnp.concatenate([params["w_lin"].reshape(-1),
                               jnp.zeros((3 * H,), jnp.float32)])       # (4H,)
    blin_row = jnp.broadcast_to(params["b_lin"], (4 * H,))              # (4H,)

    v_slab = jnp.stack([b0, b1, lin_row, blin_row], axis=0).astype(jnp.float32)       # (4, 4H)
    return w_slab, v_slab


# -----------------------------------------------------------------------------
# Per-step wrapper (single pallas_call, no grid, hidden state aliased in place)
# -----------------------------------------------------------------------------
@functools.partial(jax.jit, donate_argnums=(1,))
def single_step_gru_regression(x, h, w_slab, v_slab):
    """x: (B,1,F) f32, h: (2,B,H) f32 -> (y (B,1), h_new (2,B,H))."""
    B, S, F = x.shape
    L, Bh, H = h.shape
    assert S == 1 and L == 2 and Bh == B

    x2 = x[:, 0, :]                                   # squeeze(1) glue

    kernel = functools.partial(_single_step_gru_kernel, F=F, H=H)
    vmem = pl.BlockSpec(memory_space=pltpu.MemorySpace.VMEM)

    y, h_new = pl.pallas_call(
        kernel,
        out_shape=(jax.ShapeDtypeStruct((B, 1), jnp.float32),
                   jax.ShapeDtypeStruct((L, B, H), jnp.float32)),
        in_specs=[vmem, vmem, vmem, vmem],
        out_specs=(vmem, vmem),
        input_output_aliases={1: 1},                  # h (input 1) updated in place as output 1
    )(x2, h, w_slab, v_slab)
    return y, h_new


# -----------------------------------------------------------------------------
# Pure-JAX reference (mirrors the PyTorch module) and synthetic parameters
# -----------------------------------------------------------------------------
def reference_forward(x, h, params, eps=1e-5):
    x2 = x[:, 0, :]
    inv = 1.0 / jnp.sqrt(params["bn_var"] + eps)
    xn = (x2 - params["bn_mean"]) * inv * params["bn_gamma"] + params["bn_beta"]
    H = params["w_hh_l0"].shape[1]

    def cell(inp, hp, w_ih, w_hh, b_ih, b_hh):
        gi = inp @ w_ih.T + b_ih
        gh = hp @ w_hh.T + b_hh
        r = jax.nn.sigmoid(gi[:, :H] + gh[:, :H])
        z = jax.nn.sigmoid(gi[:, H:2 * H] + gh[:, H:2 * H])
        n = jnp.tanh(gi[:, 2 * H:] + r * gh[:, 2 * H:])
        return (1.0 - z) * n + z * hp

    h0 = cell(xn, h[0], params["w_ih_l0"], params["w_hh_l0"],
              params["b_ih_l0"], params["b_hh_l0"])
    h1 = cell(h0, h[1], params["w_ih_l1"], params["w_hh_l1"],
              params["b_ih_l1"], params["b_hh_l1"])
    y = h1 @ params["w_lin"].T + params["b_lin"]
    return y, jnp.stack([h0, h1])


def make_params(key, feature_dim, hidden_size):
    ks = jax.random.split(key, 16)
    H3 = 3 * hidden_size
    scale = 0.1
    return {
        "bn_gamma": 1.0 + 0.01 * jnp.arange(feature_dim, dtype=jnp.float32),
        "bn_beta": 0.01 * jnp.arange(feature_dim, dtype=jnp.float32),
        "bn_mean": 0.05 * jnp.arange(feature_dim, dtype=jnp.float32),
        "bn_var": 1.0 + 0.02 * jnp.arange(feature_dim, dtype=jnp.float32),
        "w_ih_l0": scale * jax.random.normal(ks[0], (H3, feature_dim), jnp.float32),
        "w_hh_l0": scale * jax.random.normal(ks[1], (H3, hidden_size), jnp.float32),
        "b_ih_l0": scale * jax.random.normal(ks[2], (H3,), jnp.float32),
        "b_hh_l0": scale * jax.random.normal(ks[3], (H3,), jnp.float32),
        "w_ih_l1": scale * jax.random.normal(ks[4], (H3, hidden_size), jnp.float32),
        "w_hh_l1": scale * jax.random.normal(ks[5], (H3, hidden_size), jnp.float32),
        "b_ih_l1": scale * jax.random.normal(ks[6], (H3,), jnp.float32),
        "b_hh_l1": scale * jax.random.normal(ks[7], (H3,), jnp.float32),
        "w_lin": scale * jax.random.normal(ks[8], (1, hidden_size), jnp.float32),
        "b_lin": scale * jax.random.normal(ks[9], (1,), jnp.float32),
    }


if __name__ == "__main__":
    batch = 8
    feature_dim = 16
    hidden_size = 32
    num_layers = 2

    key = jax.random.PRNGKey(0)
    k_x, k_p = jax.random.split(key)

    x = jax.random.normal(k_x, (batch, 1, feature_dim), jnp.float32)
    h = jnp.zeros((num_layers, batch, hidden_size), jnp.float32)   # init_hidden
    params = make_params(k_p, feature_dim, hidden_size)

    # reference computed (and materialized) before the kernel donates h
    y_exp, h_exp = reference_forward(x, h, params)
    jax.block_until_ready((y_exp, h_exp))

    # one-time parameter packing (not on the per-step path)
    w_slab, v_slab = prepare_params(params)
    jax.block_until_ready((w_slab, v_slab))

    y, h_new = single_step_gru_regression(x, h, w_slab, v_slab)
    jax.block_until_ready((y, h_new))

    assert y.shape == (batch, 1)
    assert h_new.shape == (num_layers, batch, hidden_size)
    assert jnp.allclose(y, y_exp, atol=1e-3, rtol=1e-3)
    assert jnp.allclose(h_new, h_exp, atol=1e-3, rtol=1e-3)
    print("KERNEL_OK")
</pallas_src>

<mosaic_0001>
module attributes {stable_mosaic.version = 11 : i64} {
  func.func @_single_step_gru_kernel(%arg0: memref<8x16xf32, #tpu.memory_space<vmem>>, %arg1: memref<2x8x32xf32, #tpu.memory_space<vmem>>, %arg2: memref<112x128xf32, #tpu.memory_space<vmem>>, %arg3: memref<4x128xf32, #tpu.memory_space<vmem>>, %arg4: memref<8x1xf32, #tpu.memory_space<vmem>>, %arg5: memref<2x8x32xf32, #tpu.memory_space<vmem>>) attributes {dimension_semantics = [], scalar_prefetch = 0 : i64, scratch_operands = 0 : i64, tpu.core_type = #tpu.core_type<tc>} {
    %c0 = arith.constant 0 : index
    %c0_0 = arith.constant 0 : index
    %0 = vector.load %arg0[%c0, %c0_0] : memref<8x16xf32, #tpu.memory_space<vmem>>, vector<8x16xf32>
    %c0_1 = arith.constant 0 : index
    %c0_2 = arith.constant 0 : index
    %c0_3 = arith.constant 0 : index
    %1 = vector.load %arg1[%c0_1, %c0_2, %c0_3] : memref<2x8x32xf32, #tpu.memory_space<vmem>>, vector<1x8x32xf32>
    %2 = vector.shape_cast %1 : vector<1x8x32xf32> to vector<8x32xf32>
    %c1 = arith.constant 1 : index
    %c0_4 = arith.constant 0 : index
    %c0_5 = arith.constant 0 : index
    %3 = vector.load %arg1[%c1, %c0_4, %c0_5] : memref<2x8x32xf32, #tpu.memory_space<vmem>>, vector<1x8x32xf32>
    %4 = vector.shape_cast %3 : vector<1x8x32xf32> to vector<8x32xf32>
    %c0_6 = arith.constant 0 : index
    %c0_7 = arith.constant 0 : index
    %5 = vector.load %arg2[%c0_6, %c0_7] : memref<112x128xf32, #tpu.memory_space<vmem>>, vector<16x128xf32>
    %c16 = arith.constant 16 : index
    %c0_8 = arith.constant 0 : index
    %6 = vector.load %arg2[%c16, %c0_8] : memref<112x128xf32, #tpu.memory_space<vmem>>, vector<32x128xf32>
    %c48 = arith.constant 48 : index
    %c0_9 = arith.constant 0 : index
    %7 = vector.load %arg2[%c48, %c0_9] : memref<112x128xf32, #tpu.memory_space<vmem>>, vector<32x128xf32>
    %c80 = arith.constant 80 : index
    %c0_10 = arith.constant 0 : index
    %8 = vector.load %arg2[%c80, %c0_10] : memref<112x128xf32, #tpu.memory_space<vmem>>, vector<32x128xf32>
    %c0_11 = arith.constant 0 : index
    %c0_12 = arith.constant 0 : index
    %9 = vector.load %arg3[%c0_11, %c0_12] : memref<4x128xf32, #tpu.memory_space<vmem>>, vector<1x128xf32>
    %c1_13 = arith.constant 1 : index
    %c0_14 = arith.constant 0 : index
    %10 = vector.load %arg3[%c1_13, %c0_14] : memref<4x128xf32, #tpu.memory_space<vmem>>, vector<1x128xf32>
    %c2 = arith.constant 2 : index
    %c0_15 = arith.constant 0 : index
    %11 = vector.load %arg3[%c2, %c0_15] : memref<4x128xf32, #tpu.memory_space<vmem>>, vector<1x32xf32>
    %c3 = arith.constant 3 : index
    %c0_16 = arith.constant 0 : index
    %12 = vector.load %arg3[%c3, %c0_16] : memref<4x128xf32, #tpu.memory_space<vmem>>, vector<1x1xf32>
    %cst = arith.constant dense<0.000000e+00> : vector<8x128xf32>
    %13 = tpu.matmul %0, %5, %cst {dimension_numbers = #tpu.dot_dimension_numbers<[1], [0], [0], [1], [0, 0, 1, 1], [], []>} : vector<8x16xf32>, vector<16x128xf32>, vector<8x128xf32> -> vector<8x128xf32>
    %cst_17 = arith.constant dense<0.000000e+00> : vector<8x128xf32>
    %14 = tpu.matmul %2, %6, %cst_17 {dimension_numbers = #tpu.dot_dimension_numbers<[1], [0], [0], [1], [0, 0, 1, 1], [], []>} : vector<8x32xf32>, vector<32x128xf32>, vector<8x128xf32> -> vector<8x128xf32>
    %15 = arith.addf %13, %14 : vector<8x128xf32>
    %16 = vector.broadcast %9 : vector<1x128xf32> to vector<8x128xf32>
    %17 = arith.addf %15, %16 : vector<8x128xf32>
    %18 = vector.extract_strided_slice %17 {offsets = [0, 0], sizes = [8, 32], strides = [1, 1]} : vector<8x128xf32> to vector<8x32xf32>
    %19 = arith.negf %18 : vector<8x32xf32>
    %20 = math.exp %19 : vector<8x32xf32>
    %cst_18 = arith.constant 1.000000e+00 : f32
    %21 = vector.broadcast %cst_18 : f32 to vector<8x32xf32>
    %22 = arith.addf %21, %20 : vector<8x32xf32>
    %23 = arith.divf %21, %22 : vector<8x32xf32>
    %24 = vector.extract_strided_slice %17 {offsets = [0, 32], sizes = [8, 32], strides = [1, 1]} : vector<8x128xf32> to vector<8x32xf32>
    %25 = arith.negf %24 : vector<8x32xf32>
    %26 = math.exp %25 : vector<8x32xf32>
    %cst_19 = arith.constant 1.000000e+00 : f32
    %27 = vector.broadcast %cst_19 : f32 to vector<8x32xf32>
    %28 = arith.addf %27, %26 : vector<8x32xf32>
    %29 = arith.divf %27, %28 : vector<8x32xf32>
    %30 = vector.extract_strided_slice %17 {offsets = [0, 64], sizes = [8, 32], strides = [1, 1]} : vector<8x128xf32> to vector<8x32xf32>
    %31 = vector.extract_strided_slice %17 {offsets = [0, 96], sizes = [8, 32], strides = [1, 1]} : vector<8x128xf32> to vector<8x32xf32>
    %32 = arith.mulf %23, %31 : vector<8x32xf32>
    %33 = arith.addf %30, %32 : vector<8x32xf32>
    %34 = math.tanh %33 : vector<8x32xf32>
    %cst_20 = arith.constant 1.000000e+00 : f32
    %35 = vector.broadcast %cst_20 : f32 to vector<8x32xf32>
    %36 = arith.subf %35, %29 : vector<8x32xf32>
    %37 = arith.mulf %36, %34 : vector<8x32xf32>
    %38 = arith.mulf %29, %2 : vector<8x32xf32>
    %39 = arith.addf %37, %38 : vector<8x32xf32>
    %cst_21 = arith.constant dense<0.000000e+00> : vector<8x128xf32>
    %40 = tpu.matmul %39, %7, %cst_21 {dimension_numbers = #tpu.dot_dimension_numbers<[1], [0], [0], [1], [0, 0, 1, 1], [], []>} : vector<8x32xf32>, vector<32x128xf32>, vector<8x128xf32> -> vector<8x128xf32>
    %cst_22 = arith.constant dense<0.000000e+00> : vector<8x128xf32>
    %41 = tpu.matmul %4, %8, %cst_22 {dimension_numbers = #tpu.dot_dimension_numbers<[1], [0], [0], [1], [0, 0, 1, 1], [], []>} : vector<8x32xf32>, vector<32x128xf32>, vector<8x128xf32> -> vector<8x128xf32>
    %42 = arith.addf %40, %41 : vector<8x128xf32>
    %43 = vector.broadcast %10 : vector<1x128xf32> to vector<8x128xf32>
    %44 = arith.addf %42, %43 : vector<8x128xf32>
    %45 = vector.extract_strided_slice %44 {offsets = [0, 0], sizes = [8, 32], strides = [1, 1]} : vector<8x128xf32> to vector<8x32xf32>
    %46 = arith.negf %45 : vector<8x32xf32>
    %47 = math.exp %46 : vector<8x32xf32>
    %cst_23 = arith.constant 1.000000e+00 : f32
    %48 = vector.broadcast %cst_23 : f32 to vector<8x32xf32>
    %49 = arith.addf %48, %47 : vector<8x32xf32>
    %50 = arith.divf %48, %49 : vector<8x32xf32>
    %51 = vector.extract_strided_slice %44 {offsets = [0, 32], sizes = [8, 32], strides = [1, 1]} : vector<8x128xf32> to vector<8x32xf32>
    %52 = arith.negf %51 : vector<8x32xf32>
    %53 = math.exp %52 : vector<8x32xf32>
    %cst_24 = arith.constant 1.000000e+00 : f32
    %54 = vector.broadcast %cst_24 : f32 to vector<8x32xf32>
    %55 = arith.addf %54, %53 : vector<8x32xf32>
    %56 = arith.divf %54, %55 : vector<8x32xf32>
    %57 = vector.extract_strided_slice %44 {offsets = [0, 64], sizes = [8, 32], strides = [1, 1]} : vector<8x128xf32> to vector<8x32xf32>
    %58 = vector.extract_strided_slice %44 {offsets = [0, 96], sizes = [8, 32], strides = [1, 1]} : vector<8x128xf32> to vector<8x32xf32>
    %59 = arith.mulf %50, %58 : vector<8x32xf32>
    %60 = arith.addf %57, %59 : vector<8x32xf32>
    %61 = math.tanh %60 : vector<8x32xf32>
    %cst_25 = arith.constant 1.000000e+00 : f32
    %62 = vector.broadcast %cst_25 : f32 to vector<8x32xf32>
    %63 = arith.subf %62, %56 : vector<8x32xf32>
    %64 = arith.mulf %63, %61 : vector<8x32xf32>
    %65 = arith.mulf %56, %4 : vector<8x32xf32>
    %66 = arith.addf %64, %65 : vector<8x32xf32>
    %67 = vector.broadcast %11 : vector<1x32xf32> to vector<8x32xf32>
    %68 = arith.mulf %66, %67 : vector<8x32xf32>
    %cst_26 = arith.constant dense<0.000000e+00> : vector<8xf32>
    %69 = vector.multi_reduction <add>, %68, %cst_26 [1] : vector<8x32xf32> to vector<8xf32>
    %70 = vector.shape_cast %69 : vector<8xf32> to vector<8x1xf32>
    %71 = vector.broadcast %12 : vector<1x1xf32> to vector<8x1xf32>
    %72 = arith.addf %70, %71 : vector<8x1xf32>
    %c0_27 = arith.constant 0 : index
    %c0_28 = arith.constant 0 : index
    %73 = vector.load %arg4[%c0_27, %c0_28] : memref<8x1xf32, #tpu.memory_space<vmem>>, vector<8x1xf32>
    tpu.vector_store %arg4[%c0_27, %c0_28], %72 {strides = array<i32>} : memref<8x1xf32, #tpu.memory_space<vmem>>, vector<8x1xf32>,
    %c0_29 = arith.constant 0 : index
    %c0_30 = arith.constant 0 : index
    %c0_31 = arith.constant 0 : index
    %74 = vector.load %arg5[%c0_29, %c0_30, %c0_31] : memref<2x8x32xf32, #tpu.memory_space<vmem>>, vector<1x8x32xf32>
    %75 = vector.shape_cast %74 : vector<1x8x32xf32> to vector<8x32xf32>
    %76 = vector.shape_cast %39 : vector<8x32xf32> to vector<1x8x32xf32>
    tpu.vector_store %arg5[%c0_29, %c0_30, %c0_31], %76 {strides = array<i32>} : memref<2x8x32xf32, #tpu.memory_space<vmem>>, vector<1x8x32xf32>,
    %c1_32 = arith.constant 1 : index
    %c0_33 = arith.constant 0 : index
    %c0_34 = arith.constant 0 : index
    %77 = vector.load %arg5[%c1_32, %c0_33, %c0_34] : memref<2x8x32xf32, #tpu.memory_space<vmem>>, vector<1x8x32xf32>
    %78 = vector.shape_cast %77 : vector<1x8x32xf32> to vector<8x32xf32>
    %79 = vector.shape_cast %66 : vector<8x32xf32> to vector<1x8x32xf32>
    tpu.vector_store %arg5[%c1_32, %c0_33, %c0_34], %79 {strides = array<i32>} : memref<2x8x32xf32, #tpu.memory_space<vmem>>, vector<1x8x32xf32>,
    return
  }
}

</mosaic_0001>

<bundles_post_ra>
// kernel: single_step_gru_regression.1
= control target key start
LH: loop header
LB: loop body
LE: loop exit
PB: predicated region body
PF: predicated region fallthrough
CT: control target
= control target key end

     0   :  { %11 = vsyncpa [#allocation3], 0  ;;  %s578_s0 = inlined_call_operand.hbm [shape: f32[8,16], index: 0, kind: input, shape index: {}]   ;;  %s579_s1 = inlined_call_operand.hbm [shape: f32[2,8,32], index: 1, kind: input, shape index: {}, may-alias: {1,5}]   ;;  %s580_s2 = inlined_call_operand.hbm [shape: f32[112,128], index: 2, kind: input, shape index: {}]   ;;  %s581_s3 = inlined_call_operand.hbm [shape: f32[4,128], index: 3, kind: input, shape index: {}]   ;;  %s582_s4 = inlined_call_operand.vmem [shape: f32[8,1], index: 4, kind: output, shape index: {0}]   ;;  %s583_s5 = inlined_call_operand.hbm [shape: f32[2,8,32], index: 5, kind: output, shape index: {1}, may-alias: {1,5}]  }
   0x1   :  { %12 = vsyncpa [#allocation6], 0 }
   0x2   :  { %13 = vsyncpa [#allocation9], 0  ;;  %s30_s20 = sshll.u32 %s579_s1, 4  ;;  %s31_s20 = int_to_ptr.hbm [resolvable:$true] %s30_s20 }
   0x3   :  { %14 = vsyncpa [#allocation4], 0  ;;  %s493_s21 = smov [#allocation5]   ;;  %s20_s25 = sshll.u32 %s578_s0, 4  ;;  %s21_s25 = int_to_ptr.hbm [resolvable:$true] %s20_s25 }
   0x4   :  { %s32_s22 = sshll.u32 %s493_s21, 4  ;;  %s494_s26 = smov 128   ;;  %s33_s22 = int_to_ptr.vmem [resolvable:$true] %s32_s22 }
   0x5   :  { %s495_s27 = smov 8   ;;  %s496_s28 = smov [#allocation2]  }
   0x6   :  { %38 = dma.hbm_to_vmem [thread:$0]  %s31_s20, 256, %s33_s22, [#allocation6], %s494_s26, %s494_s26, %s495_s27  }
   0x7   :  { %s22_s29 = sshll.u32 %s496_s28, 4  ;;  %s43_s6 = sshll.u32 %s580_s2, 4  ;;  %s23_s29 = int_to_ptr.vmem [resolvable:$true] %s22_s29  ;;  %s44_s6 = int_to_ptr.hbm [resolvable:$true] %s43_s6 }
   0x8   :  { %25 = dma.hbm_to_vmem [thread:$0]  %s21_s25, 128, %s23_s29, [#allocation3]  }
   0x9   :  { %s57_s0 = sshll.u32 %s581_s3, 4  ;;  %s497_s9 = smov [#allocation7]   ;;  %s58_s0 = int_to_ptr.hbm [resolvable:$true] %s57_s0 }
   0xa   :  { %s45_s10 = sshll.u32 %s497_s9, 4  ;;  %s498_s11 = smov [#allocation8]   ;;  %s46_s10 = int_to_ptr.vmem [resolvable:$true] %s45_s10 }
   0xb   :  { %51 = dma.hbm_to_vmem [thread:$0]  %s44_s6, 1792, %s46_s10, [#allocation6], %s494_s26, %s494_s26, %s495_s27  }
   0xc   :  { %s59_s12 = sshll.u32 %s498_s11, 4  ;;  %s60_s12 = int_to_ptr.vmem [resolvable:$true] %s59_s12 }
   0xd   :  { %62 = dma.hbm_to_vmem [thread:$0]  %s58_s0, 64, %s60_s12, [#allocation9]  }
   0xe   :  { %485 = dma.done.wait [#allocation3], 128  }
   0xf   :  { %486 = vsyncadd [#allocation3], 4294967168 }
  0x10   :  { %487 = dma.done.wait [#allocation6], 2048  }
  0x11   :  { %488 = vsyncadd [#allocation6], 4294965248 }
  0x12   :  { %489 = dma.done.wait [#allocation9], 64  }
  0x13   :  { %490 = vsyncadd [#allocation9], 4294967232  ;;  %v88_v0 = vld [vmem:[#allocation7 + $0x28] sm:$0xff]  ;;  %v87_v1 = vld [vmem:[#allocation7 + $0x20] sm:$0xff]  ;;  %vm125_vm0 = vcmask 130048   ;;  %vm101_vm1 = vcmask 261120  }
  0x14   :  { %117 = vmatpush.msra.mxu0 %v88_v0  ;;  %v84_v2 = vld [vmem:[#allocation7 + $0x8] sm:$0xff]  ;;  %v83_v3 = vld [vmem:[#allocation7] sm:$0xff]  ;;  %v86_v4 = vld [vmem:[#allocation7 + $0x18] sm:$0xff]  ;;  %s499_s2 = smov 32   ;;  %s500_s3 = smov 64   ;;  %vm298_vm10 = vcmask 7168  }
  0x15   :  { %143 = vmatpush.msra.mxu1 %v84_v2  ;;  %v79_v5 = vld [vmem:[#allocation2] sm:$0xff]  ;;  %v85_v6 = vld [vmem:[#allocation7 + $0x10] sm:$0xff]  ;;  %s501_s13 = smov 96   ;;  %v95_v33 = vld [vmem:[#allocation7 + $0x60] sm:$0xff]  ;;  %s502_s14 = smov [#allocation10]  }
  0x16   :  { %118 = vmatpush.msra.mxu0 %v87_v1  ;;  %v80_v7 = vld [vmem:[#allocation5] sm:$0xff]  ;;  %v96_v31 = vld [vmem:[#allocation7 + $0x68] sm:$0xff]  ;;  %v91_v34 = vld [vmem:[#allocation7 + $0x40] sm:$0xff]  ;;  %s314_s15 = sshll.u32 %s502_s14, 4  ;;  %s316_s18 = sshll.u32 %s583_s5, 4  ;;  %s315_s15 = int_to_ptr.vmem [resolvable:$true] %s314_s15  ;;  %s317_s18 = int_to_ptr.hbm [resolvable:$true] %s316_s18 }
  0x17   :  { %144 = vmatpush.msra.mxu1 %v83_v3  ;;  %v349_v9 = vld [vmem:[#allocation8] ss:$0 sm:$0xff]  ;;  %v92_v32 = vld [vmem:[#allocation7 + $0x48] sm:$0xff]  ;;  %207 = vmatpush.msra.mxu2 %v96_v31  ;;  %v94_v35 = vld [vmem:[#allocation7 + $0x58] sm:$0xff] }
  0x18   :  { %119 = vmatpush.msra.mxu0 %v86_v4  ;;  %334 = vmatmul.msk.f32.vlgmr.msra.gmra.mxu1 %vm125_vm0, %v79_v5  ;;  %v90_v36 = vld [vmem:[#allocation7 + $0x38] sm:$0xff]  ;;  %v93_v37 = vld [vmem:[#allocation7 + $0x50] sm:$0xff] }
  0x19   :  { %232 = vmatpush.msra.mxu3 %v92_v32  ;;  %208 = vmatpush.msra.mxu2 %v95_v33  ;;  %v89_v38 = vld [vmem:[#allocation7 + $0x30] sm:$0xff]  ;;  %v82_v45 = vld [vmem:[#allocation5 + $0x8] sm:$0xff] }
  0x1a   :  { %120 = vmatpush.msra.mxu0 %v85_v6  ;;  %v350_v48 = vld [vmem:[#allocation8 + $0x1] ss:$0 sm:$0xff]  ;;  %v351_v3 = vld [vmem:[#allocation8 + $0x2] ss:$0 sm:$0xff] }
  0x1b   :  { %333 = vmatmul.msk.f32.vlgmr.msra.gmra.mxu0 %vm101_vm1, %v80_v7  ;;  %233 = vmatpush.msra.mxu3 %v91_v34 }
  0x1c   :  { %209 = vmatpush.msra.mxu2 %v94_v35 }
  0x1d   :  { %234 = vmatpush.msra.mxu3 %v90_v36 }
  0x1e   :  { %210 = vmatpush.msra.mxu2 %v93_v37 }
  0x1f   :  { %235 = vmatpush.msra.mxu3 %v89_v38  ;;  %336 = vmatmul.msk.f32.vlgmr.msra.gmra.mxu2 %vm101_vm1, %v82_v45 }
  0x95   :  { %v146_v8 = vpop.f32.mrf.mxu1 }
  0x98   :  { %v122_v10 = vpop.f32.mrf.mxu0 }
  0x99   :  { %v147_v11 = vadd.f32 %v146_v8, %v122_v10 }
  0x9b   :  { %v150_v12 = vadd.f32 %v349_v9, %v147_v11 }
  0x9d   :  { %171 = vrot.lane.b32.xlu0 %v150_v12, %s499_s2  ;;  %v335_v13 = vmul.f32 -1.442695, %v150_v12 }
  0x9f   :  { %353 = vpow2.f32 %v335_v13 }
  0xa2   :  { %v212_v47 = vpop.f32.mrf.mxu2 }
  0xa5   :  { %v354_v14 = vpop.eup %353 }
  0xa6   :  { %v154_v15 = vadd.f32 1.0, %v354_v14 }
  0xa8   :  { %355 = vrcp.f32 %v154_v15  ;;  %v166_v21 = vand.u32 2147483648, %v154_v15  ;;  %vm160_vm3 = vweird.f32 %v154_v15  ;;  %v164_v22 = vand.u32 2147483647, %v154_v15 }
  0xaa   :  { %v167_v24 = vor.u32 1.1754944e-38, %v166_v21  ;;  %vm165_vm5 = vcmp.eq.f32.partialorder %v164_v22, 8.507059e+37 }
  0xae   :  { %v356_v16 = vpop.eup %355 }
  0xaf   :  { %v156_v17 = vmul.f32 %v356_v16, %v154_v15  ;;  %vm161_vm2 = vweird.f32 %v356_v16 }
  0xb0   :  { %vm162_vm4 = vmor %vm160_vm3, %vm161_vm2 }
  0xb1   :  { %v157_v18 = vsub.f32 1.0, %v156_v17 }
  0xb3   :  { %v158_v19 = vmul.f32 %v356_v16, %v157_v18  ;;  %v352_v18 = vld [vmem:[#allocation8 + $0x3] ss:$0 sm:$0xff] }
  0xb5   :  { %v159_v20 = vadd.f32 %v356_v16, %v158_v19 }
  0xb7   :  { %v163_v23 = vsel %vm162_vm4, %v356_v16, %v159_v20 }
  0xb8   :  { %v168_v26 = vsel %vm165_vm5, %v167_v24, %v163_v23 }
  0xb9   :  { %v181_v40 = vsub.f32 1.0, %v168_v26 }
 0x10f   :  { %v172_v25 = vpop.permute.xlu0 %171 }
 0x110   :  { %v174_v27 = vmul.f32 %v172_v25, %v168_v26 }
 0x112   :  { %176 = vrot.lane.b32.xlu0 %v174_v27, %s500_s3 }
 0x184   :  { %v177_v28 = vpop.permute.xlu0 %176 }
 0x185   :  { %v179_v29 = vadd.f32 %v177_v28, %v150_v12 }
 0x187   :  { %357 = vtanh.f32 %v179_v29 }
 0x18d   :  { %v358_v30 = vpop.eup %357 }
 0x18e   :  { %183 = vrot.lane.b32.xlu1 %v358_v30, %s501_s13 }
 0x196   :  { %187 = vrot.lane.b32.xlu1 %v80_v7, %s499_s2 }
 0x200   :  { %v184_v39 = vpop.permute.xlu1 %183 }
 0x201   :  { %v186_v42 = vmul.f32 %v184_v39, %v181_v40 }
 0x208   :  { %v188_v41 = vpop.permute.xlu1 %187 }
 0x209   :  { %v190_v43 = vmul.f32 %v188_v41, %v168_v26 }
 0x20b   :  { %v191_v44 = vadd.f32 %v190_v43, %v186_v42 }
 0x20d   :  { %216 = vrot.lane.b32.xlu2 %v191_v44, %s501_s13 }
 0x267   :  { %v217_v46 = vpop.permute.xlu2 %216 }
 0x268   :  { %301 = vst.msk [vmem:[#allocation10] sm:$0xff] %vm101_vm1, %v217_v46  ;;  %337 = vmatmul.msk.f32.vlgmr.msra.gmra.mxu3 %vm101_vm1, %v217_v46 }
 0x2eb   :  { %v237_v49 = vpop.f32.mrf.mxu3 }
 0x2ec   :  { %v238_v50 = vadd.f32 %v237_v49, %v212_v47 }
 0x2ee   :  { %v241_v51 = vadd.f32 %v350_v48, %v238_v50 }
 0x2f0   :  { %262 = vrot.lane.b32.xlu2 %v241_v51, %s499_s2  ;;  %v338_v52 = vmul.f32 -1.442695, %v241_v51 }
 0x2f2   :  { %359 = vpow2.f32 %v338_v52 }
 0x2f8   :  { %278 = vrot.lane.b32.xlu2 %v82_v45, %s499_s2  ;;  %v360_v53 = vpop.eup %359 }
 0x2f9   :  { %v245_v54 = vadd.f32 1.0, %v360_v53 }
 0x2fb   :  { %361 = vrcp.f32 %v245_v54  ;;  %v257_v60 = vand.u32 2147483648, %v245_v54  ;;  %vm251_vm7 = vweird.f32 %v245_v54  ;;  %v255_v61 = vand.u32 2147483647, %v245_v54 }
 0x2fd   :  { %v258_v63 = vor.u32 1.1754944e-38, %v257_v60  ;;  %vm256_vm9 = vcmp.eq.f32.partialorder %v255_v61, 8.507059e+37 }
 0x301   :  { %v362_v55 = vpop.eup %361 }
 0x302   :  { %v247_v56 = vmul.f32 %v362_v55, %v245_v54  ;;  %vm252_vm6 = vweird.f32 %v362_v55 }
 0x303   :  { %vm253_vm8 = vmor %vm251_vm7, %vm252_vm6 }
 0x304   :  { %v248_v57 = vsub.f32 1.0, %v247_v56 }
 0x306   :  { %v249_v58 = vmul.f32 %v362_v55, %v248_v57 }
 0x308   :  { %v250_v59 = vadd.f32 %v362_v55, %v249_v58 }
 0x30a   :  { %v254_v62 = vsel %vm253_vm8, %v362_v55, %v250_v59 }
 0x30b   :  { %v259_v1 = vsel %vm256_vm9, %v258_v63, %v254_v62 }
 0x30c   :  { %v272_v8 = vsub.f32 1.0, %v259_v1 }
 0x34a   :  { %v263_v0 = vpop.permute.xlu2 %262 }
 0x34b   :  { %v265_v2 = vmul.f32 %v263_v0, %v259_v1 }
 0x34d   :  { %267 = vrot.lane.b32.xlu0 %v265_v2, %s500_s3 }
 0x352   :  { %v279_v7 = vpop.permute.xlu2 %278 }
 0x353   :  { %v281_v10 = vmul.f32 %v279_v7, %v259_v1 }
 0x355   :  { %285 = vrot.lane.b32.xlu0 %v351_v3, %s499_s2 }
 0x3bf   :  { %v268_v4 = vpop.permute.xlu0 %267 }
 0x3c0   :  { %v270_v5 = vadd.f32 %v268_v4, %v241_v51 }
 0x3c2   :  { %363 = vtanh.f32 %v270_v5 }
 0x3c7   :  { %v286_v12 = vpop.permute.xlu0 %285 }
 0x3c8   :  { %v364_v6 = vpop.eup %363 }
 0x3c9   :  { %274 = vrot.lane.b32.xlu1 %v364_v6, %s501_s13 }
 0x43b   :  { %v275_v9 = vpop.permute.xlu1 %274 }
 0x43c   :  { %v277_v11 = vmul.f32 %v275_v9, %v272_v8 }
 0x43e   :  { %v282_v13 = vadd.f32 %v281_v10, %v277_v11 }
 0x440   :  { %v288_v14 = vmul.f32 %v286_v12, %v282_v13  ;;  %303 = vrot.lane.b32.xlu0 %v282_v13, %s501_s13 }
 0x442   :  { %290 = vrot.lane.b32.xlu1 %v288_v14, %s501_s13 }
 0x4b2   :  { %v304_v15 = vpop.permute.xlu0 %303 }
 0x4b3   :  { %307 = vst.msk [vmem:[#allocation10 + $0x8] sm:$0xff] %vm101_vm1, %v304_v15 }
 0x4b4   :  { %v291_v16 = vpop.permute.xlu1 %290  ;;  %322 = dma.vmem_to_hbm [thread:$0]  %s315_s15, 256, %s317_s18, [#allocation4], %s494_s26, %s494_s26, %s495_s27  }
 0x4b5   :  { %v293_v17 = vsel %vm101_vm1, %v291_v16, 0.0 }
 0x4b6   :  { %294 = vadd.xlane.f32.xlu2 %v293_v17 }
 0x529   :  { %v295_v19 = vpop.xlane.xlu2 %294 }
 0x52a   :  { %v297_v20 = vadd.f32 %v352_v18, %v295_v19 }
 0x52c   :  { %299 = vst.msk [vmem:[%s582_s4] sm:$0xff] %vm298_vm10, %v297_v20 }
 0x52d   :  { %491 = dma.done.wait [#allocation4], 256  }
 0x52e   :  { %492 = vsyncadd [#allocation4], 4294967040 }
 0x52f   :  { %329 = vsyncpa [#allocation3], 1 }
 0x530   :  { %330 = vsyncpa [#allocation6], 1 }
 0x531   :  { %331 = vsyncpa [#allocation9], 1 }
 0x532   :  { %332 = vsyncpa [#allocation4], 1 }

</bundles_post_ra>
